<compile_context>
chip_gen: v7x
topology: tpu7x:2x2x1
jax: 0.10.0
libtpu: 0.0.40
codegen_flags: <defaults>
</compile_context>

<pallas_src>
import functools

import jax
import jax.numpy as jnp
from jax.experimental import pallas as pl
from jax.experimental.pallas import tpu as pltpu

_NEG = -1e30  # finite "-inf" so masked columns never produce inf - inf = NaN

# Portable VMEM accounting: stay under the 32 MiB scoped limit that is the
# default on v6e and the safe cap on v7x (64 MiB physical); we also request it
# explicitly so v5e (16 MiB scoped default) gets the same budget.
_VMEM_LIMIT = 32 * 1024 * 1024
_VMEM_BUDGET = 26 * 1024 * 1024   # headroom under the limit for internals


def _cdiv(a, b):
    return (a + b - 1) // b


def _round_up(a, b):
    return _cdiv(a, b) * b


def _vmem_estimate(tm, tn, hidden):
    """Rough double-buffered working-set estimate (bytes)."""
    total = 0
    total += 2 * tm * hidden * 2          # x tile, bf16, double-buffered
    total += 2 * hidden * tn * 2          # W tile, bf16, double-buffered
    total += 2 * 8 * tn * 4               # bias (1, tn) -> sublane-padded
    total += 2 * tm * 128 * 4             # target (tm, 1) -> lane-padded
    total += 2 * tm * 128 * 4             # output (tm, 1) -> lane-padded
    total += 3 * tm * 128 * 4             # m / l / t scratches
    total += 3 * tm * tn * 4              # f32 logits/exp/select temporaries
    return total


def _criterion_kernel(x_ref, w_ref, b_ref, tgt_ref, inv_norm_ref, out_ref,
                      m_sc, l_sc, t_sc, *, tokens, vocab, mask_cols):
    i = pl.program_id(0)           # token-tile index ("parallel")
    j = pl.program_id(1)           # vocab-tile index (reduction, "arbitrary")
    n_vt = pl.num_programs(1)
    tm = out_ref.shape[0]          # static block sizes
    tn = w_ref.shape[1]

    @pl.when(j == 0)
    def _init():
        m_sc[...] = jnp.full_like(m_sc, _NEG)
        l_sc[...] = jnp.zeros_like(l_sc)
        t_sc[...] = jnp.zeros_like(t_sc)

    # logits tile on the MXU: bf16 x bf16 -> f32 accumulation, f32 bias add.
    logits = jnp.dot(x_ref[...], w_ref[...],
                     preferred_element_type=jnp.float32) + b_ref[...]

    # single vreg row of column ids; broadcasts against (tm, 1) operands.
    col_ids = j * tn + jax.lax.broadcasted_iota(jnp.int32, (1, tn), 1)
    tgt = tgt_ref[...]                                     # (tm, 1) int32

    def update(lg):
        # online logsumexp (all f32; no (tokens, vocab) logp is ever built).
        m_prev = m_sc[...]
        m_new = jnp.maximum(m_prev, jnp.max(lg, axis=-1, keepdims=True))
        alpha = jnp.exp(m_prev - m_new)
        l_sc[...] = alpha * l_sc[...] + jnp.sum(jnp.exp(lg - m_new),
                                                axis=-1, keepdims=True)
        m_sc[...] = m_new
        # exactly one vocab tile contains each row's target column.
        t_sc[...] += jnp.sum(jnp.where(col_ids == tgt, lg, 0.0),
                             axis=-1, keepdims=True)

    def finalize():
        # per-token NLL = logsumexp(logits) - logit[target]; one log per row.
        nll = (m_sc[...] + jnp.log(l_sc[...])) - t_sc[...]
        # padded token rows hold OOB-read garbage; where() discards it (even
        # NaN/Inf) because the unselected operand never propagates.
        row_ids = i * tm + jax.lax.broadcasted_iota(jnp.int32, (tm, 1), 0)
        nll = jnp.where(row_ids < tokens, nll, 0.0)
        out_ref[...] = nll * inv_norm_ref[0]               # .div(normalization)

    if mask_cols:
        # Only the last (padded) vocab tile needs column masking; keep the
        # compare/select off the hot path for every other tile.
        @pl.when(j < n_vt - 1)
        def _hot():
            update(logits)

        @pl.when(j == n_vt - 1)
        def _last():
            update(jnp.where(col_ids < vocab, logits, _NEG))
            finalize()
    else:
        update(logits)

        @pl.when(j == n_vt - 1)
        def _last():
            finalize()


def criterion_forward(dec_out, weight, bias, target, normalization,
                      *, tm=1024, tn=1024):
    """
    dec_out       : (tokens, hidden)  float/bf16 -- decoder output (flattened)
    weight        : (hidden, vocab)   float/bf16 -- generator projection
    bias          : (vocab,)          float
    target        : (tokens,)         int        -- gold token ids
    normalization : scalar                        -- "sents" or "tokens" count
    returns scalar f32: sum_t -log softmax(x_t W + b)[target_t] / normalization
    """
    tokens, hidden = dec_out.shape
    vocab = weight.shape[1]

    # ---- tile sizing -------------------------------------------------------
    tn = min(tn, _round_up(vocab, 128))     # vocab tile (lane-aligned)
    tm = min(tm, _round_up(tokens, 8))      # token tile (sublane-aligned)
    # v7x megacore: keep >=2 token tiles when possible so both TCs get work.
    if tokens > 8 and _cdiv(tokens, tm) < 2:
        tm = max(8, _round_up(_cdiv(tokens, 2), 8))
    # shrink tiles until the (double-buffered) working set fits the budget.
    while tm > 256 and _vmem_estimate(tm, tn, hidden) > _VMEM_BUDGET:
        tm = max(256, _round_up(tm // 2, 8))
    while tn > 256 and _vmem_estimate(tm, tn, hidden) > _VMEM_BUDGET:
        tn = max(256, _round_up(tn // 2, 128))

    grid = (_cdiv(tokens, tm), _cdiv(vocab, tn))
    mask_cols = (vocab % tn) != 0           # padded last vocab tile?

    # bf16 MXU operands with f32 accumulation; skip the cast when the caller
    # already keeps activations/weights in bf16 (saves a full HBM pass over
    # the (hidden, vocab) matrix per call).
    x = dec_out if dec_out.dtype == jnp.bfloat16 else dec_out.astype(jnp.bfloat16)
    w = weight if weight.dtype == jnp.bfloat16 else weight.astype(jnp.bfloat16)
    b = bias.reshape(1, vocab).astype(jnp.float32)
    tgt = target.reshape(tokens, 1).astype(jnp.int32)
    inv_norm = (1.0 / jnp.asarray(normalization, jnp.float32)).reshape(1)

    kernel = functools.partial(_criterion_kernel, tokens=tokens, vocab=vocab,
                               mask_cols=mask_cols)

    # TODO(synk): x / target could be single-buffered (pipeline_mode) since
    # their block index is constant along the vocab axis; kept double-buffered
    # for portability, and the VMEM budget above already accounts for it.
    per_token = pl.pallas_call(
        kernel,
        out_shape=jax.ShapeDtypeStruct((tokens, 1), jnp.float32),
        grid_spec=pltpu.PrefetchScalarGridSpec(
            num_scalar_prefetch=0,
            grid=grid,
            in_specs=[
                pl.BlockSpec((tm, hidden), lambda i, j: (i, 0)),    # x
                pl.BlockSpec((hidden, tn), lambda i, j: (0, j)),    # W
                pl.BlockSpec((1, tn), lambda i, j: (0, j)),         # bias
                pl.BlockSpec((tm, 1), lambda i, j: (i, 0)),         # target
                pl.BlockSpec(memory_space=pltpu.MemorySpace.SMEM),  # 1/norm
            ],
            out_specs=pl.BlockSpec((tm, 1), lambda i, j: (i, 0)),
            scratch_shapes=[pltpu.VMEM((tm, 1), jnp.float32),   # running max
                            pltpu.VMEM((tm, 1), jnp.float32),   # running sumexp
                            pltpu.VMEM((tm, 1), jnp.float32)],  # target logit
        ),
        compiler_params=pltpu.CompilerParams(
            dimension_semantics=("parallel", "arbitrary"),
            vmem_limit_bytes=_VMEM_LIMIT),
    )(x, w, b, tgt, inv_norm)

    # per_token is already scaled by 1/normalization inside the kernel.
    return jnp.sum(per_token)


def _reference(dec_out, weight, bias, target, normalization):
    logits = dec_out @ weight + bias
    logp = jax.nn.log_softmax(logits, axis=-1)
    nll = -jnp.sum(jnp.take_along_axis(logp, target[:, None], axis=-1))
    return nll / normalization


if __name__ == "__main__":
    key = jax.random.PRNGKey(0)
    # small shapes; vocab=320 deliberately not a multiple of the 128 vocab
    # tile so the padded-column (last-tile mask) path is exercised.
    batch, seq, hidden, vocab = 2, 8, 32, 320
    tokens = batch * seq

    k1, k2, k3, k4 = jax.random.split(key, 4)
    dec_out = jax.random.normal(k1, (tokens, hidden), dtype=jnp.float32)
    weight = jax.random.normal(k2, (hidden, vocab), dtype=jnp.float32) * 0.05
    bias = jax.random.normal(k3, (vocab,), dtype=jnp.float32) * 0.01
    target = jax.random.randint(k4, (tokens,), 0, vocab, dtype=jnp.int32)
    normalization = float(tokens)   # normalize by "tokens"

    # hoist the bf16 cast out of the call (per perf review it would otherwise
    # be an extra full HBM pass over the weight matrix every step).
    x_bf16 = dec_out.astype(jnp.bfloat16)
    w_bf16 = weight.astype(jnp.bfloat16)

    # small explicit tiles -> real (2 x 3) grid exercising the online-softmax
    # accumulation, the unmasked hot path and the masked last vocab tile.
    loss = criterion_forward(x_bf16, w_bf16, bias, target, normalization,
                             tm=8, tn=128)
    loss = jax.block_until_ready(loss)

    # reference sees the same bf16-cast operands the kernel feeds the MXU.
    ref = _reference(dec_out.astype(jnp.bfloat16).astype(jnp.float32),
                     weight.astype(jnp.bfloat16).astype(jnp.float32),
                     bias, target, normalization)
    assert jnp.allclose(loss, ref, rtol=1e-4, atol=1e-4), (loss, ref)

    # also run the production-default tiling path (auto-clamped tm/tn,
    # single vocab tile -> mask+finalize branch) to make sure it compiles.
    loss2 = jax.block_until_ready(
        criterion_forward(x_bf16, w_bf16, bias, target, normalization))
    assert jnp.allclose(loss2, ref, rtol=1e-4, atol=1e-4), (loss2, ref)

    print("KERNEL_OK")
</pallas_src>

<mosaic_0001>
module attributes {stable_mosaic.version = 11 : i64} {
  func.func @_criterion_kernel(%arg0: i32, %arg1: i32, %arg2: memref<8x32xbf16, #tpu.memory_space<vmem>>, %arg3: memref<32x128xbf16, #tpu.memory_space<vmem>>, %arg4: memref<1x128xf32, #tpu.memory_space<vmem>>, %arg5: memref<8x1xi32, #tpu.memory_space<vmem>>, %arg6: memref<1xf32, #tpu.memory_space<smem>>, %arg7: memref<8x1xf32, #tpu.memory_space<vmem>>, %arg8: memref<8x1xf32, #tpu.memory_space<vmem>>, %arg9: memref<8x1xf32, #tpu.memory_space<vmem>>, %arg10: memref<8x1xf32, #tpu.memory_space<vmem>>) attributes {dimension_semantics = [#tpu.dimension_semantics<parallel>, #tpu.dimension_semantics<arbitrary>], iteration_bounds = array<i64: 2, 3>, scalar_prefetch = 0 : i64, scratch_operands = 3 : i64, tpu.core_type = #tpu.core_type<tc>, window_params = [{transform_indices = @transform_0, window_bounds = array<i64: 8, 32>}, {transform_indices = @transform_1, window_bounds = array<i64: 32, 128>}, {transform_indices = @transform_2, window_bounds = array<i64: 1, 128>}, {transform_indices = @transform_3, window_bounds = array<i64: 8, 1>}, {transform_indices = @transform_4, window_bounds = array<i64: 1>}, {transform_indices = @transform_5, window_bounds = array<i64: 8, 1>}]} {
    %c0_i32 = arith.constant 0 : i32
    %0 = arith.cmpi eq, %arg1, %c0_i32 : i32
    %1 = arith.extui %0 : i1 to i32
    %c0_i32_0 = arith.constant 0 : i32
    %2 = arith.cmpi ne, %1, %c0_i32_0 : i32
    scf.if %2 {
      %cst_11 = arith.constant -1.000000e+30 : f32
      %20 = vector.broadcast %cst_11 : f32 to vector<8x1xf32>
      %c0_12 = arith.constant 0 : index
      %c0_13 = arith.constant 0 : index
      %21 = vector.load %arg8[%c0_12, %c0_13] : memref<8x1xf32, #tpu.memory_space<vmem>>, vector<8x1xf32>
      tpu.vector_store %arg8[%c0_12, %c0_13], %20 {strides = array<i32>} : memref<8x1xf32, #tpu.memory_space<vmem>>, vector<8x1xf32>,
      %cst_14 = arith.constant 0.000000e+00 : f32
      %22 = vector.broadcast %cst_14 : f32 to vector<8x1xf32>
      %c0_15 = arith.constant 0 : index
      %c0_16 = arith.constant 0 : index
      %23 = vector.load %arg9[%c0_15, %c0_16] : memref<8x1xf32, #tpu.memory_space<vmem>>, vector<8x1xf32>
      tpu.vector_store %arg9[%c0_15, %c0_16], %22 {strides = array<i32>} : memref<8x1xf32, #tpu.memory_space<vmem>>, vector<8x1xf32>,
      %cst_17 = arith.constant 0.000000e+00 : f32
      %24 = vector.broadcast %cst_17 : f32 to vector<8x1xf32>
      %c0_18 = arith.constant 0 : index
      %c0_19 = arith.constant 0 : index
      %25 = vector.load %arg10[%c0_18, %c0_19] : memref<8x1xf32, #tpu.memory_space<vmem>>, vector<8x1xf32>
      tpu.vector_store %arg10[%c0_18, %c0_19], %24 {strides = array<i32>} : memref<8x1xf32, #tpu.memory_space<vmem>>, vector<8x1xf32>,
    } else {
    }
    %c0 = arith.constant 0 : index
    %c0_1 = arith.constant 0 : index
    %3 = vector.load %arg2[%c0, %c0_1] : memref<8x32xbf16, #tpu.memory_space<vmem>>, vector<8x32xbf16>
    %c0_2 = arith.constant 0 : index
    %c0_3 = arith.constant 0 : index
    %4 = vector.load %arg3[%c0_2, %c0_3] : memref<32x128xbf16, #tpu.memory_space<vmem>>, vector<32x128xbf16>
    %cst = arith.constant dense<0.000000e+00> : vector<8x128xf32>
    %5 = tpu.matmul %3, %4, %cst {dimension_numbers = #tpu.dot_dimension_numbers<[1], [0], [0], [1], [0, 0, 1, 1], [], []>} : vector<8x32xbf16>, vector<32x128xbf16>, vector<8x128xf32> -> vector<8x128xf32>
    %c0_4 = arith.constant 0 : index
    %c0_5 = arith.constant 0 : index
    %6 = vector.load %arg4[%c0_4, %c0_5] : memref<1x128xf32, #tpu.memory_space<vmem>>, vector<1x128xf32>
    %7 = vector.broadcast %6 : vector<1x128xf32> to vector<8x128xf32>
    %8 = arith.addf %5, %7 : vector<8x128xf32>
    %c128_i32 = arith.constant 128 : i32
    %9 = arith.muli %arg1, %c128_i32 : i32
    %10 = tpu.iota {dimensions = array<i32: 1>} : vector<1x128xi32>
    %11 = vector.broadcast %9 : i32 to vector<1x128xi32>
    %12 = arith.addi %11, %10 : vector<1x128xi32>
    %c0_6 = arith.constant 0 : index
    %c0_7 = arith.constant 0 : index
    %13 = vector.load %arg5[%c0_6, %c0_7] : memref<8x1xi32, #tpu.memory_space<vmem>>, vector<8x1xi32>
    %c2_i32 = arith.constant 2 : i32
    %14 = arith.cmpi slt, %arg1, %c2_i32 : i32
    %15 = arith.extui %14 : i1 to i32
    %c0_i32_8 = arith.constant 0 : i32
    %16 = arith.cmpi ne, %15, %c0_i32_8 : i32
    scf.if %16 {
      %c0_11 = arith.constant 0 : index
      %c0_12 = arith.constant 0 : index
      %20 = vector.load %arg8[%c0_11, %c0_12] : memref<8x1xf32, #tpu.memory_space<vmem>>, vector<8x1xf32>
      %cst_13 = arith.constant dense<0xFF800000> : vector<8xf32>
      %21 = vector.multi_reduction <maximumf>, %8, %cst_13 [1] : vector<8x128xf32> to vector<8xf32>
      %22 = vector.shape_cast %21 : vector<8xf32> to vector<8x1xf32>
      %23 = arith.maximumf %20, %22 : vector<8x1xf32>
      %24 = arith.subf %20, %23 : vector<8x1xf32>
      %25 = math.exp %24 : vector<8x1xf32>
      %c0_14 = arith.constant 0 : index
      %c0_15 = arith.constant 0 : index
      %26 = vector.load %arg9[%c0_14, %c0_15] : memref<8x1xf32, #tpu.memory_space<vmem>>, vector<8x1xf32>
      %27 = arith.mulf %25, %26 : vector<8x1xf32>
      %28 = vector.broadcast %23 : vector<8x1xf32> to vector<8x128xf32>
      %29 = arith.subf %8, %28 : vector<8x128xf32>
      %30 = math.exp %29 : vector<8x128xf32>
      %cst_16 = arith.constant dense<0.000000e+00> : vector<8xf32>
      %31 = vector.multi_reduction <add>, %30, %cst_16 [1] : vector<8x128xf32> to vector<8xf32>
      %32 = vector.shape_cast %31 : vector<8xf32> to vector<8x1xf32>
      %33 = arith.addf %27, %32 : vector<8x1xf32>
      %c0_17 = arith.constant 0 : index
      %c0_18 = arith.constant 0 : index
      %34 = vector.load %arg9[%c0_17, %c0_18] : memref<8x1xf32, #tpu.memory_space<vmem>>, vector<8x1xf32>
      tpu.vector_store %arg9[%c0_17, %c0_18], %33 {strides = array<i32>} : memref<8x1xf32, #tpu.memory_space<vmem>>, vector<8x1xf32>,
      %c0_19 = arith.constant 0 : index
      %c0_20 = arith.constant 0 : index
      %35 = vector.load %arg8[%c0_19, %c0_20] : memref<8x1xf32, #tpu.memory_space<vmem>>, vector<8x1xf32>
      tpu.vector_store %arg8[%c0_19, %c0_20], %23 {strides = array<i32>} : memref<8x1xf32, #tpu.memory_space<vmem>>, vector<8x1xf32>,
      %c0_21 = arith.constant 0 : index
      %c0_22 = arith.constant 0 : index
      %36 = vector.load %arg10[%c0_21, %c0_22] : memref<8x1xf32, #tpu.memory_space<vmem>>, vector<8x1xf32>
      %37 = vector.broadcast %12 : vector<1x128xi32> to vector<8x128xi32>
      %38 = vector.broadcast %13 : vector<8x1xi32> to vector<8x128xi32>
      %39 = arith.cmpi eq, %37, %38 : vector<8x128xi32>
      %cst_23 = arith.constant 0.000000e+00 : f32
      %40 = vector.broadcast %cst_23 : f32 to vector<8x128xf32>
      %41 = arith.select %39, %8, %40 : vector<8x128xi1>, vector<8x128xf32>
      %cst_24 = arith.constant dense<0.000000e+00> : vector<8xf32>
      %42 = vector.multi_reduction <add>, %41, %cst_24 [1] : vector<8x128xf32> to vector<8xf32>
      %43 = vector.shape_cast %42 : vector<8xf32> to vector<8x1xf32>
      %44 = arith.addf %36, %43 : vector<8x1xf32>
      %c0_25 = arith.constant 0 : index
      %c0_26 = arith.constant 0 : index
      %45 = vector.load %arg10[%c0_25, %c0_26] : memref<8x1xf32, #tpu.memory_space<vmem>>, vector<8x1xf32>
      tpu.vector_store %arg10[%c0_25, %c0_26], %44 {strides = array<i32>} : memref<8x1xf32, #tpu.memory_space<vmem>>, vector<8x1xf32>,
    } else {
    }
    %c2_i32_9 = arith.constant 2 : i32
    %17 = arith.cmpi eq, %arg1, %c2_i32_9 : i32
    %18 = arith.extui %17 : i1 to i32
    %c0_i32_10 = arith.constant 0 : i32
    %19 = arith.cmpi ne, %18, %c0_i32_10 : i32
    scf.if %19 {
      %c320_i32 = arith.constant 320 : i32
      %20 = vector.broadcast %c320_i32 : i32 to vector<1x128xi32>
      %21 = arith.cmpi slt, %12, %20 : vector<1x128xi32>
      %cst_11 = arith.constant -1.000000e+30 : f32
      %22 = vector.shape_cast %21 : vector<1x128xi1> to vector<1x128xi1>
      %23 = vector.broadcast %22 : vector<1x128xi1> to vector<8x128xi1>
      %24 = vector.broadcast %cst_11 : f32 to vector<8x128xf32>
      %25 = arith.select %23, %8, %24 : vector<8x128xi1>, vector<8x128xf32>
      %c0_12 = arith.constant 0 : index
      %c0_13 = arith.constant 0 : index
      %26 = vector.load %arg8[%c0_12, %c0_13] : memref<8x1xf32, #tpu.memory_space<vmem>>, vector<8x1xf32>
      %cst_14 = arith.constant dense<0xFF800000> : vector<8xf32>
      %27 = vector.multi_reduction <maximumf>, %25, %cst_14 [1] : vector<8x128xf32> to vector<8xf32>
      %28 = vector.shape_cast %27 : vector<8xf32> to vector<8x1xf32>
      %29 = arith.maximumf %26, %28 : vector<8x1xf32>
      %30 = arith.subf %26, %29 : vector<8x1xf32>
      %31 = math.exp %30 : vector<8x1xf32>
      %c0_15 = arith.constant 0 : index
      %c0_16 = arith.constant 0 : index
      %32 = vector.load %arg9[%c0_15, %c0_16] : memref<8x1xf32, #tpu.memory_space<vmem>>, vector<8x1xf32>
      %33 = arith.mulf %31, %32 : vector<8x1xf32>
      %34 = vector.broadcast %29 : vector<8x1xf32> to vector<8x128xf32>
      %35 = arith.subf %25, %34 : vector<8x128xf32>
      %36 = math.exp %35 : vector<8x128xf32>
      %cst_17 = arith.constant dense<0.000000e+00> : vector<8xf32>
      %37 = vector.multi_reduction <add>, %36, %cst_17 [1] : vector<8x128xf32> to vector<8xf32>
      %38 = vector.shape_cast %37 : vector<8xf32> to vector<8x1xf32>
      %39 = arith.addf %33, %38 : vector<8x1xf32>
      %c0_18 = arith.constant 0 : index
      %c0_19 = arith.constant 0 : index
      %40 = vector.load %arg9[%c0_18, %c0_19] : memref<8x1xf32, #tpu.memory_space<vmem>>, vector<8x1xf32>
      tpu.vector_store %arg9[%c0_18, %c0_19], %39 {strides = array<i32>} : memref<8x1xf32, #tpu.memory_space<vmem>>, vector<8x1xf32>,
      %c0_20 = arith.constant 0 : index
      %c0_21 = arith.constant 0 : index
      %41 = vector.load %arg8[%c0_20, %c0_21] : memref<8x1xf32, #tpu.memory_space<vmem>>, vector<8x1xf32>
      tpu.vector_store %arg8[%c0_20, %c0_21], %29 {strides = array<i32>} : memref<8x1xf32, #tpu.memory_space<vmem>>, vector<8x1xf32>,
      %c0_22 = arith.constant 0 : index
      %c0_23 = arith.constant 0 : index
      %42 = vector.load %arg10[%c0_22, %c0_23] : memref<8x1xf32, #tpu.memory_space<vmem>>, vector<8x1xf32>
      %43 = vector.broadcast %12 : vector<1x128xi32> to vector<8x128xi32>
      %44 = vector.broadcast %13 : vector<8x1xi32> to vector<8x128xi32>
      %45 = arith.cmpi eq, %43, %44 : vector<8x128xi32>
      %cst_24 = arith.constant 0.000000e+00 : f32
      %46 = vector.broadcast %cst_24 : f32 to vector<8x128xf32>
      %47 = arith.select %45, %25, %46 : vector<8x128xi1>, vector<8x128xf32>
      %cst_25 = arith.constant dense<0.000000e+00> : vector<8xf32>
      %48 = vector.multi_reduction <add>, %47, %cst_25 [1] : vector<8x128xf32> to vector<8xf32>
      %49 = vector.shape_cast %48 : vector<8xf32> to vector<8x1xf32>
      %50 = arith.addf %42, %49 : vector<8x1xf32>
      %c0_26 = arith.constant 0 : index
      %c0_27 = arith.constant 0 : index
      %51 = vector.load %arg10[%c0_26, %c0_27] : memref<8x1xf32, #tpu.memory_space<vmem>>, vector<8x1xf32>
      tpu.vector_store %arg10[%c0_26, %c0_27], %50 {strides = array<i32>} : memref<8x1xf32, #tpu.memory_space<vmem>>, vector<8x1xf32>,
      %c0_28 = arith.constant 0 : index
      %c0_29 = arith.constant 0 : index
      %52 = vector.load %arg8[%c0_28, %c0_29] : memref<8x1xf32, #tpu.memory_space<vmem>>, vector<8x1xf32>
      %c0_30 = arith.constant 0 : index
      %c0_31 = arith.constant 0 : index
      %53 = vector.load %arg9[%c0_30, %c0_31] : memref<8x1xf32, #tpu.memory_space<vmem>>, vector<8x1xf32>
      %54 = math.log %53 : vector<8x1xf32>
      %55 = arith.addf %52, %54 : vector<8x1xf32>
      %c0_32 = arith.constant 0 : index
      %c0_33 = arith.constant 0 : index
      %56 = vector.load %arg10[%c0_32, %c0_33] : memref<8x1xf32, #tpu.memory_space<vmem>>, vector<8x1xf32>
      %57 = arith.subf %55, %56 : vector<8x1xf32>
      %c8_i32 = arith.constant 8 : i32
      %58 = arith.muli %arg0, %c8_i32 : i32
      %59 = tpu.iota {dimensions = array<i32: 0>} : vector<8x1xi32>
      %60 = vector.broadcast %58 : i32 to vector<8x1xi32>
      %61 = arith.addi %60, %59 : vector<8x1xi32>
      %c16_i32 = arith.constant 16 : i32
      %62 = vector.broadcast %c16_i32 : i32 to vector<8x1xi32>
      %63 = arith.cmpi slt, %61, %62 : vector<8x1xi32>
      %cst_34 = arith.constant 0.000000e+00 : f32
      %64 = vector.broadcast %cst_34 : f32 to vector<8x1xf32>
      %65 = arith.select %63, %57, %64 : vector<8x1xi1>, vector<8x1xf32>
      %c0_35 = arith.constant 0 : index
      %66 = memref.load %arg6[%c0_35] : memref<1xf32, #tpu.memory_space<smem>>
      %67 = vector.broadcast %66 : f32 to vector<8x1xf32>
      %68 = arith.mulf %65, %67 : vector<8x1xf32>
      %c0_36 = arith.constant 0 : index
      %c0_37 = arith.constant 0 : index
      %69 = vector.load %arg7[%c0_36, %c0_37] : memref<8x1xf32, #tpu.memory_space<vmem>>, vector<8x1xf32>
      tpu.vector_store %arg7[%c0_36, %c0_37], %68 {strides = array<i32>} : memref<8x1xf32, #tpu.memory_space<vmem>>, vector<8x1xf32>,
    } else {
    }
    return
  }
  func.func @transform_0(%arg0: i32, %arg1: i32) -> (i32, i32) {
    %c0_i32 = arith.constant 0 : i32
    %c0_i32_0 = arith.constant 0 : i32
    return %arg0, %c0_i32 : i32, i32
  }
  func.func @transform_1(%arg0: i32, %arg1: i32) -> (i32, i32) {
    %c0_i32 = arith.constant 0 : i32
    %c0_i32_0 = arith.constant 0 : i32
    return %c0_i32, %arg1 : i32, i32
  }
  func.func @transform_2(%arg0: i32, %arg1: i32) -> (i32, i32) {
    %c0_i32 = arith.constant 0 : i32
    %c0_i32_0 = arith.constant 0 : i32
    return %c0_i32, %arg1 : i32, i32
  }
  func.func @transform_3(%arg0: i32, %arg1: i32) -> (i32, i32) {
    %c0_i32 = arith.constant 0 : i32
    %c0_i32_0 = arith.constant 0 : i32
    return %arg0, %c0_i32 : i32, i32
  }
  func.func @transform_4(%arg0: i32, %arg1: i32) -> i32 {
    %c0_i32 = arith.constant 0 : i32
    %c0_i32_0 = arith.constant 0 : i32
    return %c0_i32 : i32
  }
  func.func @transform_5(%arg0: i32, %arg1: i32) -> (i32, i32) {
    %c0_i32 = arith.constant 0 : i32
    %c0_i32_0 = arith.constant 0 : i32
    return %arg0, %c0_i32 : i32, i32
  }
}

</mosaic_0001>

<bundles_post_ra>
// kernel: tpu_custom_call.1
= control target key start
LH: loop header
LB: loop body
LE: loop exit
PB: predicated region body
PF: predicated region fallthrough
CT: control target
= control target key end

     0   :  { %s1048_s0 = inlined_call_operand.vmem [shape: bf16[16,32], index: 0, kind: input, shape index: {}]   ;;  %s1049_s1 = inlined_call_operand.hbm [shape: bf16[32,320], index: 1, kind: input, shape index: {}]   ;;  %s1050_s2 = inlined_call_operand.vmem [shape: f32[1,320], index: 2, kind: input, shape index: {}]   ;;  %s1051_s3 = inlined_call_operand.vmem [shape: s32[16,1], index: 3, kind: input, shape index: {}]   ;;  %s1052_s4 = inlined_call_operand.<no memory space> [shape: f32[1], index: 4, kind: input, shape index: {}]   ;;  %s1053_s5 = inlined_call_operand.vmem [shape: f32[16,1], index: 5, kind: output, shape index: {}]  }
   0x1   :  { %1054 = sst [smem:[#allocation9_spill]] %s1049_s1 }
   0x2   :  { %10 = sst [smem:[#allocation5]] %s1052_s4 }
   0x3   :  { %11 = vsyncpa [#allocation7], 0 }
   0x4   :  { %13 = vsyncpa [#allocation7 + $0x1], 0  ;;  %s861_s20 = smov 0   ;;  %s863_s21 = smov 0  }
   0x5   :  { %s865_s22 = smov 0   ;;  %s867_s23 = smov 0  }
   0x6   :  { %s869_s24 = smov 0   ;;  %s871_s25 = smov 0  }
   0x7   :  { %s873_s26 = smov 0   ;;  %s875_s27 = smov 0  }
   0x8 LB: > { %s591_s4 = sadd.s32 4294967295, %s816_s27   ;;  %s28_s28 = sadd.s32 1, %s808_s25  ;;  %s816_s27 = sphi %s875_s27, %s19_s27   ;;  %s812_s26 = sphi %s873_s26, %s1066_s26   ;;  %s808_s25 = sphi %s871_s25, %s1065_s25   ;;  %s804_s24 = sphi %s869_s24, %s1064_s24   ;;  %s800_s23 = sphi %s867_s23, %s1063_s23   ;;  %s796_s22 = sphi %s865_s22, %s1062_s22   ;;  %s792_s21 = sphi %s863_s21, %s1061_s21   ;;  %s788_s20 = sphi %s861_s20, %s1060_s20  }
   0x9   : > { %p29_p0 = scmp.ge.s32.totalorder %s28_s28, 3  ;;  %s31_s29 = sadd.s32 1, %s812_s26 }
   0xa   : > { %s64_s30 = sadd.s32 1, %s796_s22  ;;  %p71_p1 = scmp.ne.s32.totalorder %s796_s22, %s792_s21 }
   0xb   : > { %s1068_s28 = smov (%p29_p0, %s28_s28), 0  ;;  %s1070_s29 = smov (!%p29_p0, %s31_s29), %s812_s26 }
   0xc   : > { %s61_s6 = ssub.s32 %s808_s25, %s1068_s28  ;;  %p72_p2 = scmp.eq.s32.totalorder %s816_s27, 0 }
   0xd   : > { %p33_p3 = scmp.ge.s32.totalorder %s1070_s29, 2  ;;  %p62_p4 = scmp.eq.s32.totalorder %s61_s6, 0 }
   0xe   : > { %p911_p5 = por %p72_p2, %p71_p1  ;;  %p77_p6 = scmp.ne.s32.totalorder %s792_s21, %s788_s20 }
   0xf   : > { %s1072_s29 = smov (%p33_p3, %s1070_s29), 0  ;;  %p78_p7 = scmp.eq.s32.totalorder %s591_s4, 0 }
  0x10   : > { %s919_s8 = scalar_select %p62_p4, %s796_s22, %s64_s30  }
  0x11   : > { %p630_p8 = scmp.lt.s32.totalorder %s816_s27, 6  ;;  %s210_s9 = sand.u32 1, %s796_s22  }
  0x12   : > { %p923_p9 = por %p78_p7, %p77_p6  ;;  %s595_s11 = sshll.u32 %s210_s9, 4 }
  0x13   : > { %s596_s12 = sshll.u32 %s808_s25, 6  ;;  %s1057_s1 = sld [smem:[#allocation9_spill]] }
  0x14   : > { %s214_s16 = scalar_lea.vmem [#allocation6], %s595_s11  ;;  %p935_p10 = pnand %p630_p8, %p911_p5 }
  0x15   : > { %s220_s17 = sshll.u32 %s214_s16, 4  ;;  %s942_s19 = scalar_lea.sflag [#allocation7], %s210_s9  ;;  %s939_s17 = int_to_ptr.vmem [resolvable:$true] %s220_s17 }
  0x16   : > { %p722_p13 = pneg %p935_p10 }
  0x19   : > { %s931_s15 = scalar_lea.hbm %s1057_s1, %s596_s12  ;;  %s725_s6 = scalar_lea.hbm %s1057_s1, 768 }
  0x1a   : > { %s720_s20 = scalar_lea.hbm %s931_s15, 256  ;;  %p726_p2 = scmp.lt.u32.totalorder %s931_s15, %s1057_s1 }
  0x1b   : > { %p721_p12 = scmp.ne.s32.totalorder %s931_s15, %s720_s20  ;;  %p727_p3 = scmp.lt.u32.totalorder %s725_s6, %s720_s20 }
  0x1c   : > { %p729_p5 = scmp.lt.u32.totalorder %s720_s20, %s931_s15 }
  0x1d   : > { %p723_p0 = pnand %p722_p13, %p721_p12  ;;  %p728_p4 = por %p727_p3, %p726_p2 }
  0x1f   : > { %p724_p1 = pneg %p723_p0  ;;  %p730_p6 = por %p729_p5, %p728_p4 }
  0x21   : > { %p731_p7 = pnand %p730_p6, %p724_p1 }
  0x23   : > { %734 = shalt.err (!%p731_p7)
}
  0x24   : > { %s735_s9 = scalar_lea.vmem %s939_s17, 256  ;;  %s818_s12 = smov [#allocation6]  }
  0x25   : > { %p736_p8 = scmp.ne.s32.totalorder %s939_s17, %s735_s9  ;;  %s740_s13 = sshll.u32 %s818_s12, 4  ;;  %s741_s13 = int_to_ptr.vmem [resolvable:$false] %s740_s13 }
  0x26   : > { %s742_s14 = scalar_lea.vmem %s741_s13, 512  ;;  %p743_p11 = scmp.lt.s32.totalorder %s939_s17, %s741_s13 }
  0x27   : > { %p738_p12 = pnand %p736_p8, %p722_p13  ;;  %p744_p2 = scmp.lt.s32.totalorder %s742_s14, %s735_s9 }
  0x29   : > { %p739_p0 = pneg %p738_p12  ;;  %p745_p3 = por %p744_p2, %p743_p11 }
  0x2b   : > { %p746_p4 = pnand %p745_p3, %p739_p0 }
  0x2d   : > { %749 = shalt.err (!%p746_p4)
}
  0x2e   : > { %s819_s16 = smov 192   ;;  %s820_s20 = smov 64  }
  0x2f   : > { %s821_s4 = smov 4   ;;  %p241_p13 = scmp.lt.s32.totalorder %s816_s27, 7 }
  0x30   : > { %629 = dma.hbm_to_vmem [thread:$0]  (!%p935_p10), %s931_s15, 256, %s939_s17, %s942_s19, %s819_s16, %s820_s20, %s821_s4  }
  0x31   : > { %p1059_p1 = scmp.ge.s32.totalorder %s816_s27, 1 }
  0x33   : > { %p242_p5 = pnand %p1059_p1, %p241_p13 }
  0x34   : > { %s247_s30 = sand.u32 (!%p242_p5), 1, %s792_s21  }
  0x35   : > { %245 = sbr.rel (%p242_p5) target bundleno = 1197 (0x4ad), region = 40  ;;  %s598_s6 = sshll.u32 (!%p242_p5), %s247_s30, 4 }
  0x36   : > { %s248_s7 = scalar_lea.sflag (!%p242_p5), [#allocation7], %s247_s30  ;;  %s251_s11 = scalar_lea.vmem (!%p242_p5), [#allocation6], %s598_s6 }
  0x3c   : > { %783 = dma.done.wait (%p923_p9), %s248_s7, 256  }
  0x3d   : > { %785 = vsyncadd (%p923_p9), %s248_s7, 4294967040  ;;  %p288_p10 = scmp.lt.s32.totalorder %s804_s24, 1  ;;  %p292_p11 = scmp.lt.s32.totalorder %s800_s23, 2 }
  0x3e   : > { %p602_p9 = scmp.ne.s32.totalorder %s800_s23, 0 }
  0x3f   : > { %s289_s15 = scalar_select %p288_p10, %s804_s24, 1 }
  0x40   : > { %s982_s17 = scalar_select %p292_p11, %s800_s23, 2 }
  0x41   : > { %s599_s18 = sshll.u32 %s289_s15, 2  ;;  %s600_s19 = sshll.u32 %s289_s15, 3  ;;  %vm308_vm0 = vcmask (!%p602_p9), 7168   ;;  %v822_v0 = vmov (!%p602_p9), -1e+30   ;;  %v823_v1 = vmov (!%p602_p9), 0.0  }
  0x42   : > { %s291_s13 = scalar_lea.vmem %s1048_s0, %s599_s18  ;;  %s294_s10 = scalar_lea.vmem %s1050_s2, %s982_s17  ;;  %309 = vst.msk [vmem:[#allocation2] sm:$0xff] (!%p602_p9), %vm308_vm0, %v822_v0  ;;  %310 = vst.msk [vmem:[#allocation3] sm:$0xff] (!%p602_p9), %vm308_vm0, %v823_v1 }
  0x43   : > { %s298_s30 = scalar_lea.vmem %s1051_s3, %s600_s19  ;;  %s997_s1 = scalar_lea.vmem %s1053_s5, %s600_s19  ;;  %311 = vst.msk [vmem:[#allocation4] sm:$0xff] (!%p602_p9), %vm308_vm0, %v823_v1 }
  0x44   : > { %307 = sbr.rel (%p602_p9) target bundleno = 75 (0x4b), region = 48 }
  0x4b PF: > { %v704_v2 = vld [vmem:[%s251_s11] sm:$0xff]   ;;  %v824_v3 = vmov 0.0   ;;  %v705_v4 = vld [vmem:[%s251_s11 + $0x8] sm:$0xff]   ;;  %vm825_vm1 = vmmov 0   ;;  %vm336_vm2 = vcmask 261120   ;;  %v381_v6 = vlaneseq  ;;  %s607_s15 = sshll.u32 %s800_s23, 7 }
  0x4c   : > { %616 = vmatprep.subr.bf16.mxu0 %v824_v3  ;;  %620 = vmatprep.mubr.msk.bf16.mxu0 %vm825_vm1, %v824_v3  ;;  %v312_v5 = vld [vmem:[%s291_s13] sm:$0xf]  ;;  %v383_v8 = vstv %s607_s15  ;;  %p608_p6 = scmp.ge.s32.totalorder %s800_s23, 2 }
  0x4d   : > { %617 = vmatpush3.bf16.msra.mxu0 %v704_v2  ;;  %v382_v7 = vand.u32 127, %v381_v6  ;;  %v385_v10 = vld [vmem:[%s298_s30] sm:$0xff]  ;;  %v826_v17 = vmov (!%p608_p6), 0   ;;  %vm410_vm3 = vcmask (!%p608_p6), 7168   ;;  %v397_v30 = vld [vmem:[#allocation3] sm:$0xff] (!%p608_p6)  ;;  %v413_v34 = vld [vmem:[#allocation4] sm:$0xff] (!%p608_p6) }
  0x4e   : > { %618 = vmatprep.subr.bf16.mxu0 %v824_v3  ;;  %v603_v11 = vld [vmem:[%s294_s10] ss:$0 sm:$0xff]  ;;  %706 = vset.pattern.permute.xlu0 (!%p608_p6), %v826_v17 }
  0x4f   : > { %v1002_v9 = vadd.s32 %v383_v8, %v382_v7  ;;  %707 = vset.pattern.permute.xlu1 (!%p608_p6), %v826_v17  ;;  %v390_v18 = vld [vmem:[#allocation2] sm:$0xff] (!%p608_p6) }
  0x50   : > { %415 = vperm.xlu1 (!%p608_p6), %707, %v385_v10  }
  0x51   : > { %619 = vmatpush3.bf16.msra.mxu0 %v705_v4 }
  0x54   : > { %621 = vmatmul.mubr.msk.bf16.vlgmr.msra.gmra.mrb[0].mxu0 %vm336_vm2, %v312_v5 }
  0xcf   : > { %v416_v25 = vpop.permute.xlu1 (!%p608_p6), %415 }
  0xd0   : > { %vm417_vm4 = vcmp.eq.s32.totalorder (!%p608_p6), %v1002_v9, %v416_v25 }
 0x124   : > { %389 = sbr.rel (%p608_p6) target bundleno = 734 (0x2de), region = 52 }
 0x127   : > { %v374_v12 = vpop.f32.mrb[0].mxu0 }
 0x128   : > { %v375_v13 = vadd.f32 %v603_v11, %v374_v12  ;;  %v622_v14 = vpop.f32.mrb[1].mxu0 }
 0x129   : > { %v377_v15 = vpop.f32.mrb[2].mxu0 }
 0x12a   : > { %v623_v16 = vpop.f32.mrb[3].mxu0  ;;  %391 = vmax.xlane.f32.xlu0 (!%p608_p6), %v375_v13  ;;  %v418_v27 = vsel (!%p608_p6), %vm417_vm4, %v375_v13, 0.0 }
 0x1b7   : > { %v392_v19 = vpop.xlane.xlu0 %391 }
 0x1b8   : > { %v393_v20 = vmax.f32 %v390_v18, %v392_v19 }
 0x1ba   : > { %v394_v21 = vsub.f32 %v390_v18, %v393_v20  ;;  %412 = vst.msk [vmem:[#allocation2] sm:$0xff] %vm410_vm3, %v393_v20  ;;  %401 = vperm.xlu0 %706, %v393_v20  }
 0x1bc   : > { %v395_v28 = vmul.f32 1.442695, %v394_v21 }
 0x239   : > { %v402_v22 = vpop.permute.xlu0 %401 }
 0x23a   : > { %v404_v23 = vsub.f32 %v375_v13, %v402_v22 }
 0x23c   : > { %v405_v24 = vmul.f32 1.442695, %v404_v23 }
 0x23e   : > { %708 = vpow2.f32 %v405_v24 }
 0x23f   : > { %710 = vpow2.f32 %v395_v28 }
 0x248   : > { %v709_v26 = vpop.eup %708 }
 0x249   : > { %407 = vadd.xlane.f32.xlu1 %v709_v26  ;;  %v711_v29 = vpop.eup %710 }
 0x24a   : > { %v398_v31 = vmul.f32 %v711_v29, %v397_v30 }
 0x24d   : > { %419 = vadd.xlane.f32.xlu1 %v418_v27 }
 0x2d6   : > { %v408_v32 = vpop.xlane.xlu1 %407 }
 0x2d7   : > { %v409_v33 = vadd.f32 %v408_v32, %v398_v31 }
 0x2d9   : > { %411 = vst.msk [vmem:[#allocation3] sm:$0xff] %vm410_vm3, %v409_v33 }
 0x2da   : > { %v420_v35 = vpop.xlane.xlu1 %419 }
 0x2db   : > { %v421_v36 = vadd.f32 %v420_v35, %v413_v34 }
 0x2dd   : > { %422 = vst.msk [vmem:[#allocation4] sm:$0xff] %vm410_vm3, %v421_v36 }
 0x2de PF: > { %p609_p7 = scmp.ne.s32.totalorder %s800_s23, 2 }
 0x2df   : > { %vm427_vm5 = vcmp.lt.s32.totalorder (!%p609_p7), %v1002_v9, 320  ;;  %v827_v38 = vmov (!%p609_p7), 0   ;;  %v431_v39 = vld [vmem:[#allocation2] sm:$0xff] (!%p609_p7)  ;;  %vm451_vm6 = vcmask (!%p609_p7), 7168   ;;  %s610_s23 = sshll.u32 (!%p609_p7), %s804_s24, 3  ;;  %v473_v59 = vshrl.u32 (!%p609_p7), %v381_v6, 7 }
 0x2e0   : > { %426 = sbr.rel (%p609_p7) target bundleno = 1197 (0x4ad), region = 56  ;;  %v430_v37 = vsel (!%p609_p7), %vm427_vm5, %v375_v13, -1e+30  ;;  %712 = vset.pattern.permute.xlu0 (!%p609_p7), %v827_v38  ;;  %713 = vset.pattern.permute.xlu1 (!%p609_p7), %v827_v38  ;;  %v438_v51 = vld [vmem:[#allocation3] sm:$0xff] (!%p609_p7)  ;;  %v474_v60 = vstv (!%p609_p7), %s610_s23  ;;  %s478_s11 = sld [smem:[#allocation5]] (!%p609_p7) }
 0x2e1   : > { %432 = vmax.xlane.f32.xlu0 (!%p609_p7), %v430_v37  ;;  %456 = vperm.xlu1 (!%p609_p7), %713, %v385_v10   ;;  %v475_v62 = vadd.s32 (!%p609_p7), %v474_v60, %v473_v59 }
 0x2e3   : > { %vm476_vm8 = vcmp.lt.s32.totalorder (!%p609_p7), %v475_v62, 16 }
 0x2e4   : > { %v454_v55 = vld [vmem:[#allocation4] sm:$0xff] (!%p609_p7) }
 0x2e6   : > { %v479_v3 = vstv (!%p609_p7), %s478_s11 }
 0x360   : > { %v457_v46 = vpop.permute.xlu1 %456 }
 0x361   : > { %vm458_vm7 = vcmp.eq.s32.totalorder %v1002_v9, %v457_v46 }
 0x362   : > { %v459_v48 = vsel %vm458_vm7, %v430_v37, 0.0 }
 0x36e   : > { %v433_v40 = vpop.xlane.xlu0 %432 }
 0x36f   : > { %v434_v41 = vmax.f32 %v431_v39, %v433_v40 }
 0x371   : > { %v435_v42 = vsub.f32 %v431_v39, %v434_v41  ;;  %453 = vst.msk [vmem:[#allocation2] sm:$0xff] %vm451_vm6, %v434_v41  ;;  %442 = vperm.xlu0 %712, %v434_v41  }
 0x373   : > { %v436_v49 = vmul.f32 1.442695, %v435_v42 }
 0x378   : > { %v464_v0 = vld [vmem:[#allocation2] sm:$0xff] }
 0x3f0   : > { %v443_v43 = vpop.permute.xlu0 %442 }
 0x3f1   : > { %v445_v44 = vsub.f32 %v430_v37, %v443_v43 }
 0x3f3   : > { %v446_v45 = vmul.f32 1.442695, %v445_v44 }
 0x3f5   : > { %714 = vpow2.f32 %v446_v45 }
 0x3f6   : > { %716 = vpow2.f32 %v436_v49 }
 0x3ff   : > { %v715_v47 = vpop.eup %714 }
 0x400   : > { %448 = vadd.xlane.f32.xlu1 %v715_v47  ;;  %v717_v50 = vpop.eup %716 }
 0x401   : > { %v439_v52 = vmul.f32 %v717_v50, %v438_v51 }
 0x404   : > { %460 = vadd.xlane.f32.xlu1 %v459_v48 }
 0x48d   : > { %v449_v53 = vpop.xlane.xlu1 %448 }
 0x48e   : > { %v450_v54 = vadd.f32 %v449_v53, %v439_v52 }
 0x490   : > { %452 = vst.msk [vmem:[#allocation3] sm:$0xff] %vm451_vm6, %v450_v54 }
 0x491   : > { %v461_v56 = vpop.xlane.xlu1 %460 }
 0x492   : > { %v462_v57 = vadd.f32 %v461_v56, %v454_v55 }
 0x494   : > { %463 = vst.msk [vmem:[#allocation4] sm:$0xff] %vm451_vm6, %v462_v57 }
 0x497   : > { %v465_v58 = vld [vmem:[#allocation3] sm:$0xff] }
 0x498   : > { %718 = vlog2.f32 %v465_v58 }
 0x49b   : > { %v469_v1 = vld [vmem:[#allocation4] sm:$0xff] }
 0x4a2   : > { %v719_v61 = vpop.eup %718 }
 0x4a3   : > { %v467_v63 = vmul.f32 0.6931472, %v719_v61 }
 0x4a5   : > { %v468_v2 = vadd.f32 %v467_v63, %v464_v0 }
 0x4a7   : > { %v470_v4 = vsub.f32 %v468_v2, %v469_v1 }
 0x4a9   : > { %v477_v5 = vsel %vm476_vm8, %v470_v4, 0.0 }
 0x4aa   : > { %v480_v7 = vmul.f32 %v479_v3, %v477_v5 }
 0x4ac   : > { %481 = vst.msk [vmem:[%s997_s1] sm:$0xff] %vm451_vm6, %v480_v7 }
 0x4ad PF: > { %s19_s27 = sadd.s32 1, %s816_s27   ;;  %s1060_s20 = smov %s792_s21 }
 0x4ae   : > { %p16_p8 = scmp.ge.s32.totalorder %s19_s27, 8   ;;  %s1061_s21 = smov %s796_s22 }
 0x4af   : > { %s1062_s22 = smov %s919_s8  ;;  %s1063_s23 = smov %s808_s25 }
 0x4b0   : > { %s1064_s24 = smov %s812_s26  ;;  %s1065_s25 = smov %s1068_s28 }
 0x4b1   : > { %s1066_s26 = smov %s1072_s29  ;;  %18 = sbr.rel (!%p16_p8) target bundleno = 8 (0x8), region = 101 }
 0x4b8   :  { %501 = vsyncpa [#allocation7], 1 }
 0x4b9   :  { %503 = vsyncpa [#allocation7 + $0x1], 1 }

</bundles_post_ra>
